<compile_context>
chip_gen: v6e
topology: v6e:2x2x1
jax: 0.10.0
libtpu: 0.0.40
codegen_flags: <defaults>
</compile_context>

<pallas_src>
import math
from functools import partial

import jax
import jax.numpy as jnp
from jax.experimental import pallas as pl
from jax.experimental.pallas import tpu as pltpu

# ---- hyperparameters (mirror the PyTorch globals) ----
batch_size = 2
n_heads = 4
seq_max_len = 8
Q_size = K_size = V_size = 8

NEG_INF_FILL = -1000000000.0


def _sdpa_kernel(qkv_ref, lens_ref, out_ref, *, B, H, S, D, inv_sqrt_d):
    N = B * H
    q = qkv_ref[0]                       # [N, S, D]
    k = qkv_ref[1]                       # [N, S, D]
    v = qkv_ref[2]                       # [N, S, D]

    # Rebuild the key-padding mask in-kernel from per-(batch*head) key lengths:
    # masked[n, q, k] = (k >= len[n]).  Replaces a whole HBM->VMEM mask DMA with an
    # iota + compare on the VPU.
    kpos = jax.lax.broadcasted_iota(jnp.int32, (N, S, S), 2)   # key index on lanes
    masked = kpos >= lens_ref[...]                             # [N,1,1] -> [N,S,S]

    # One batched MXU matmul over the fused batch*head axis.
    s = jnp.einsum('nqd,nkd->nqk', q, k,
                   preferred_element_type=jnp.float32) * inv_sqrt_d
    s = jnp.where(masked, NEG_INF_FILL, s)                     # [N, S, S]

    # Softmax ACROSS HEADS (PyTorch nn.Softmax(dim=1) on [B, H, S, S]).
    # Leading-dim reshapes only (last two dims untouched) -> layout no-ops.
    s4 = s.reshape(B, H, S, S)
    m = jnp.max(s4, axis=1, keepdims=True)                     # [B, 1, S, S]
    e = jnp.exp(s4 - m)
    den = jnp.sum(e, axis=1, keepdims=True)                    # [B, 1, S, S]
    p = (e * pl.reciprocal(den, approx=True)).reshape(N, S, S)

    # One batched MXU matmul for the attention-weighted values.
    out_ref[...] = jnp.einsum('nqk,nkd->nqd', p, v,
                              preferred_element_type=jnp.float32)


def scaled_dot_product_attention(s_q, s_k, s_v, key_lens):
    """s_q/s_k/s_v: [B, H, S, D] float32.
    key_lens: [B] int32 valid-key lengths; key positions >= key_lens[b] are masked,
    exactly matching get_attn_pad_mask(...).unsqueeze(1).repeat(1, n_heads, 1, 1)
    fed to the original module's attn_mask.
    """
    B, H, S, D = s_q.shape
    N = B * H

    # Single stacked input -> one HBM->VMEM DMA instead of three.
    # TODO(synk): in a full BERT layer, emit this [3,N,S,D] slab directly from the
    # fused QKV projection (or fuse that projection + this attention into one
    # kernel) instead of stacking here; a fully general [B,H,S,S] attn_mask would
    # also require reinstating the mask tensor input.
    qkv = jnp.stack([s_q, s_k, s_v]).reshape(3, N, S, D)

    # Per-(batch*head) key lengths, pre-shaped [N,1,1] so the kernel broadcasts them
    # against the [N,S,S] score tensor with no in-kernel relayout.
    lens_n = jnp.broadcast_to(
        key_lens.astype(jnp.int32)[:, None], (B, H)).reshape(N, 1, 1)

    vmem = pltpu.MemorySpace.VMEM
    out = pl.pallas_call(
        partial(_sdpa_kernel, B=B, H=H, S=S, D=D,
                inv_sqrt_d=1.0 / math.sqrt(K_size)),
        out_shape=jax.ShapeDtypeStruct((N, S, D), jnp.float32),
        in_specs=[pl.BlockSpec(memory_space=vmem),
                  pl.BlockSpec(memory_space=vmem)],
        out_specs=pl.BlockSpec(memory_space=vmem),
        cost_estimate=pl.CostEstimate(
            flops=2 * (2 * N * S * S * D),          # two batched matmuls
            transcendentals=2 * N * S * S,          # exp + reciprocal
            bytes_accessed=(3 * N * S * D + N * S * D) * 4 + N * 4),
    )(qkv, lens_n)
    return out.reshape(B, H, S, D)


def sdpa_reference(s_q, s_k, s_v, attn_mask):
    """Pure-JAX reference matching the PyTorch forward exactly (full mask tensor)."""
    score = jnp.einsum('bhqd,bhkd->bhqk', s_q, s_k) / math.sqrt(K_size)
    score = jnp.where(attn_mask, NEG_INF_FILL, score)
    score = jax.nn.softmax(score, axis=1)          # quirky: softmax over heads
    return jnp.einsum('bhqk,bhkd->bhqd', score, s_v)


if __name__ == "__main__":
    key = jax.random.PRNGKey(0)
    kq, kk, kv = jax.random.split(key, 3)

    B, H, S, D = batch_size, n_heads, seq_max_len, Q_size
    s_q = jax.random.normal(kq, (B, H, S, D), jnp.float32)
    s_k = jax.random.normal(kk, (B, H, S, D), jnp.float32)
    s_v = jax.random.normal(kv, (B, H, S, D), jnp.float32)

    # Deterministic per-batch valid-key lengths (positions >= length are padding).
    key_lens = jnp.array([6, 8], dtype=jnp.int32)

    out = scaled_dot_product_attention(s_q, s_k, s_v, key_lens)
    jax.block_until_ready(out)
    assert out.shape == (B, H, S, D)

    # Reference uses the fully materialized boolean mask (exact PyTorch semantics),
    # built the same way get_attn_pad_mask + repeat-over-heads would.
    key_pos = jnp.arange(S)[None, None, None, :]               # [1, 1, 1, S]
    attn_mask = jnp.broadcast_to(
        key_pos >= key_lens[:, None, None, None], (B, H, S, S))  # [B, H, S, S] bool
    ref = sdpa_reference(s_q, s_k, s_v, attn_mask)
    assert jnp.allclose(out, ref, rtol=1e-2, atol=1e-2), "mismatch vs reference"

    print("KERNEL_OK")
</pallas_src>

<mosaic_0001>
module attributes {stable_mosaic.version = 11 : i64} {
  func.func @_sdpa_kernel(%arg0: memref<3x8x8x8xf32, #tpu.memory_space<vmem>>, %arg1: memref<8x1x1xi32, #tpu.memory_space<vmem>>, %arg2: memref<8x8x8xf32, #tpu.memory_space<vmem>>) attributes {dimension_semantics = [], scalar_prefetch = 0 : i64, scratch_operands = 0 : i64, tpu.core_type = #tpu.core_type<tc>} {
    %c0 = arith.constant 0 : index
    %c0_0 = arith.constant 0 : index
    %c0_1 = arith.constant 0 : index
    %c0_2 = arith.constant 0 : index
    %0 = vector.load %arg0[%c0, %c0_0, %c0_1, %c0_2] : memref<3x8x8x8xf32, #tpu.memory_space<vmem>>, vector<1x8x8x8xf32>
    %1 = vector.shape_cast %0 : vector<1x8x8x8xf32> to vector<8x8x8xf32>
    %c1 = arith.constant 1 : index
    %c0_3 = arith.constant 0 : index
    %c0_4 = arith.constant 0 : index
    %c0_5 = arith.constant 0 : index
    %2 = vector.load %arg0[%c1, %c0_3, %c0_4, %c0_5] : memref<3x8x8x8xf32, #tpu.memory_space<vmem>>, vector<1x8x8x8xf32>
    %3 = vector.shape_cast %2 : vector<1x8x8x8xf32> to vector<8x8x8xf32>
    %c2 = arith.constant 2 : index
    %c0_6 = arith.constant 0 : index
    %c0_7 = arith.constant 0 : index
    %c0_8 = arith.constant 0 : index
    %4 = vector.load %arg0[%c2, %c0_6, %c0_7, %c0_8] : memref<3x8x8x8xf32, #tpu.memory_space<vmem>>, vector<1x8x8x8xf32>
    %5 = vector.shape_cast %4 : vector<1x8x8x8xf32> to vector<8x8x8xf32>
    %6 = tpu.iota {dimensions = array<i32: 2>} : vector<8x8x8xi32>
    %c0_9 = arith.constant 0 : index
    %c0_10 = arith.constant 0 : index
    %c0_11 = arith.constant 0 : index
    %7 = vector.load %arg1[%c0_9, %c0_10, %c0_11] : memref<8x1x1xi32, #tpu.memory_space<vmem>>, vector<8x1x1xi32>
    %8 = vector.broadcast %7 : vector<8x1x1xi32> to vector<8x8x8xi32>
    %9 = arith.cmpi sge, %6, %8 : vector<8x8x8xi32>
    "tpu.trace_start"() <{level = 10 : i32, message = "nqd,nkd->nqk"}> : () -> ()
    %cst = arith.constant dense<0.000000e+00> : vector<8x8x8xf32>
    %10 = tpu.matmul %1, %3, %cst {dimension_numbers = #tpu.dot_dimension_numbers<[2], [2], [1], [1], [0, 0, 0, 1, 1, 1], [0], [0]>} : vector<8x8x8xf32>, vector<8x8x8xf32>, vector<8x8x8xf32> -> vector<8x8x8xf32>
    "tpu.trace_stop"() : () -> ()
    %cst_12 = arith.constant 0.353553385 : f32
    %11 = vector.broadcast %cst_12 : f32 to vector<8x8x8xf32>
    %12 = arith.mulf %10, %11 : vector<8x8x8xf32>
    %cst_13 = arith.constant -1.000000e+09 : f32
    %13 = vector.broadcast %cst_13 : f32 to vector<8x8x8xf32>
    %14 = arith.select %9, %13, %12 : vector<8x8x8xi1>, vector<8x8x8xf32>
    %15 = vector.shape_cast %14 : vector<8x8x8xf32> to vector<2x4x8x8xf32>
    %cst_14 = arith.constant dense<0xFF800000> : vector<2x8x8xf32>
    %16 = vector.multi_reduction <maximumf>, %15, %cst_14 [1] : vector<2x4x8x8xf32> to vector<2x8x8xf32>
    %17 = vector.shape_cast %16 : vector<2x8x8xf32> to vector<2x1x8x8xf32>
    %18 = vector.broadcast %17 : vector<2x1x8x8xf32> to vector<2x4x8x8xf32>
    %19 = arith.subf %15, %18 : vector<2x4x8x8xf32>
    %20 = math.exp %19 : vector<2x4x8x8xf32>
    %cst_15 = arith.constant dense<0.000000e+00> : vector<2x8x8xf32>
    %21 = vector.multi_reduction <add>, %20, %cst_15 [1] : vector<2x4x8x8xf32> to vector<2x8x8xf32>
    %22 = vector.shape_cast %21 : vector<2x8x8xf32> to vector<2x1x8x8xf32>
    %23 = tpu.reciprocal %22 {approx = true} : vector<2x1x8x8xf32> -> vector<2x1x8x8xf32>
    %24 = vector.broadcast %23 : vector<2x1x8x8xf32> to vector<2x4x8x8xf32>
    %25 = arith.mulf %20, %24 : vector<2x4x8x8xf32>
    %26 = vector.shape_cast %25 : vector<2x4x8x8xf32> to vector<8x8x8xf32>
    "tpu.trace_start"() <{level = 10 : i32, message = "nqk,nkd->nqd"}> : () -> ()
    %cst_16 = arith.constant dense<0.000000e+00> : vector<8x8x8xf32>
    %27 = tpu.matmul %26, %5, %cst_16 {dimension_numbers = #tpu.dot_dimension_numbers<[2], [1], [1], [2], [0, 0, 0, 1, 1, 2], [0], [0]>} : vector<8x8x8xf32>, vector<8x8x8xf32>, vector<8x8x8xf32> -> vector<8x8x8xf32>
    "tpu.trace_stop"() : () -> ()
    %c0_17 = arith.constant 0 : index
    %c0_18 = arith.constant 0 : index
    %c0_19 = arith.constant 0 : index
    %28 = vector.load %arg2[%c0_17, %c0_18, %c0_19] : memref<8x8x8xf32, #tpu.memory_space<vmem>>, vector<8x8x8xf32>
    tpu.vector_store %arg2[%c0_17, %c0_18, %c0_19], %27 {strides = array<i32>} : memref<8x8x8xf32, #tpu.memory_space<vmem>>, vector<8x8x8xf32>,
    return
  }
}

</mosaic_0001>

<bundles_post_ra>
// kernel: tpu_custom_call.1
= control target key start
LH: loop header
LB: loop body
LE: loop exit
PB: predicated region body
PF: predicated region fallthrough
CT: control target
= control target key end

     0   :  { %7 = vsyncpa [#allocation3], 0  ;;  %s1803_s0 = inlined_call_operand.hbm [shape: f32[3,8,8,8], index: 0, kind: input, shape index: {}]   ;;  %s1804_s1 = inlined_call_operand.vmem [shape: s32[8,1,1], index: 1, kind: input, shape index: {}]   ;;  %s1805_s2 = inlined_call_operand.hbm [shape: f32[8,8,8], index: 2, kind: output, shape index: {}]  }
   0x1   :  { %8 = vsyncpa [#allocation4], 0  ;;  %s1639_s9 = smov [#allocation2]  }
   0x2   :  { %s14_s10 = sshll.u32 %s1639_s9, 4  ;;  %s15_s10 = int_to_ptr.vmem [resolvable:$true] %s14_s10 }
   0x3   :  { %s1603_s11 = scalar_lea.vmem %s15_s10, 3072  ;;  %p1608_p1 = scmp.lt.s32.totalorder %s15_s10, %s15_s10 }
   0x4   :  { %p1604_p0 = scmp.ne.s32.totalorder %s15_s10, %s1603_s11  ;;  %p1609_p2 = scmp.lt.s32.totalorder %s1603_s11, %s1603_s11 }
   0x6   :  { %p1610_p3 = por %p1609_p2, %p1608_p1 }
   0x8   :  { %p1611_p4 = pnand %p1610_p3, %p1604_p0 }
   0xa   :  { %1614 = shalt.err (!%p1611_p4)
}
   0xb   :  { %s1640_s12 = smov 128   ;;  %s1641_s13 = smov 8  }
   0xc   :  { %20 = dma.hbm_to_vmem [thread:$0]  %s1803_s0, 3072, %s15_s10, [#allocation3], %s1640_s12, %s1640_s12, %s1641_s13  }
   0xd   :  { %1635 = dma.done.wait [#allocation3], 3072  }
   0xe   :  { %1636 = vsyncadd [#allocation3], 4294964224  ;;  %v1642_v0 = vmov 0.0   ;;  %vm1643_vm0 = vmmov 0   ;;  %v1644_v1 = vmov 0   ;;  %vm126_vm1 = vcmask 64512  }
   0xf   :  { %1486 = vmatprep.subr.mxu0 %v1642_v0  ;;  %1491 = vmatprep.subr.mxu1 %v1642_v0  ;;  %v35_v2 = vld [vmem:[#allocation2 + $0x40] sm:$0xff]  ;;  %v36_v3 = vld [vmem:[#allocation2 + $0x48] sm:$0xff]  ;;  %v37_v6 = vld [vmem:[#allocation2 + $0x50] sm:$0xff]  ;;  %v52_v28 = vlaneseq }
  0x10   :  { %1488 = vmatprep.mubr.msk.f32.mxu0 %vm1643_vm0, %v1642_v0  ;;  %1493 = vmatprep.mubr.msk.f32.mxu1 %vm1643_vm0, %v1642_v0  ;;  %v26_v4 = vld [vmem:[#allocation2] sm:$0xff]  ;;  %v27_v5 = vld [vmem:[#allocation2 + $0x8] sm:$0xff]  ;;  %v38_v7 = vld [vmem:[#allocation2 + $0x58] sm:$0xff] }
  0x11   :  { %1574 = vset.pattern.permute.xlu1 %v1644_v1  ;;  %1573 = vset.pattern.permute.xlu0 %v1644_v1  ;;  %v28_v8 = vld [vmem:[#allocation2 + $0x10] sm:$0xff]  ;;  %v29_v9 = vld [vmem:[#allocation2 + $0x18] sm:$0xff]  ;;  %v39_v10 = vld [vmem:[#allocation2 + $0x60] sm:$0xff]  ;;  %v1739_v31 = vand.u32 127, %v52_v28 }
  0x12   :  { %1487 = vmatpush3.xpose.msk.msra.mxu0 %vm126_vm1, %v35_v2  ;;  %1492 = vmatpush3.xpose.msk.msra.mxu1 %vm126_vm1, %v36_v3  ;;  %v40_v11 = vld [vmem:[#allocation2 + $0x68] sm:$0xff]  ;;  %v30_v12 = vld [vmem:[#allocation2 + $0x20] sm:$0xff]  ;;  %v41_v14 = vld [vmem:[#allocation2 + $0x70] sm:$0xff] }
  0x13   :  { %1496 = vmatprep.subr.mxu0 %v1642_v0  ;;  %1501 = vmatprep.subr.mxu1 %v1642_v0  ;;  %v31_v13 = vld [vmem:[#allocation2 + $0x28] sm:$0xff]  ;;  %v42_v15 = vld [vmem:[#allocation2 + $0x78] sm:$0xff]  ;;  %v1424_v16 = vld [vmem:[%s1804_s1 + $0x2] ss:$0 sm:$0xff] }
  0x14   :  { %v1422_v17 = vld [vmem:[%s1804_s1] ss:$0 sm:$0xff]  ;;  %v32_v18 = vld [vmem:[#allocation2 + $0x30] sm:$0xff]  ;;  %v33_v19 = vld [vmem:[#allocation2 + $0x38] sm:$0xff]  ;;  %101 = vperm.xlu1 %1574, %v1424_v16  }
  0x15   :  { %1489 = vmatmul.mubr.msk.f32.vlgmr.msra.gmra.mxu0 %vm126_vm1, %v26_v4  ;;  %1494 = vmatmul.mubr.msk.f32.vlgmr.msra.gmra.mxu1 %vm126_vm1, %v27_v5  ;;  %v1425_v20 = vld [vmem:[%s1804_s1 + $0x3] ss:$0 sm:$0xff]  ;;  %v1423_v21 = vld [vmem:[%s1804_s1 + $0x1] ss:$0 sm:$0xff]  ;;  %v1427_v22 = vld [vmem:[%s1804_s1 + $0x5] ss:$0 sm:$0xff] }
  0x16   :  { %1497 = vmatpush3.xpose.msk.msra.mxu0 %vm126_vm1, %v37_v6  ;;  %1502 = vmatpush3.xpose.msk.msra.mxu1 %vm126_vm1, %v38_v7  ;;  %v1426_v23 = vld [vmem:[%s1804_s1 + $0x4] ss:$0 sm:$0xff]  ;;  %v1429_v24 = vld [vmem:[%s1804_s1 + $0x7] ss:$0 sm:$0xff]  ;;  %v1428_v25 = vld [vmem:[%s1804_s1 + $0x6] ss:$0 sm:$0xff] }
  0x17   :  { %1498 = vmatprep.mubr.msk.f32.mxu0 %vm1643_vm0, %v1642_v0  ;;  %1503 = vmatprep.mubr.msk.f32.mxu1 %vm1643_vm0, %v1642_v0  ;;  %v44_v26 = vld [vmem:[#allocation2 + $0x80] sm:$0xff]  ;;  %v45_v27 = vld [vmem:[#allocation2 + $0x88] sm:$0xff]  ;;  %s1645_s1 = smov [#allocation5]  }
  0x18   :  { %1506 = vmatprep.subr.mxu0 %v1642_v0  ;;  %1511 = vmatprep.subr.mxu1 %v1642_v0  ;;  %s1410_s3 = sshll.u32 %s1645_s1, 4  ;;  %s1411_s3 = int_to_ptr.vmem [resolvable:$true] %s1410_s3 }
  0x19   :  { %1499 = vmatmul.mubr.msk.f32.vlgmr.msra.gmra.mxu0 %vm126_vm1, %v28_v8  ;;  %1504 = vmatmul.mubr.msk.f32.vlgmr.msra.gmra.mxu1 %vm126_vm1, %v29_v9  ;;  %s1615_s4 = scalar_lea.vmem %s1411_s3, 1024  ;;  %p1620_p6 = scmp.lt.s32.totalorder %s1411_s3, %s1411_s3 }
  0x1a   :  { %1507 = vmatpush3.xpose.msk.msra.mxu0 %vm126_vm1, %v39_v10  ;;  %1512 = vmatpush3.xpose.msk.msra.mxu1 %vm126_vm1, %v40_v11  ;;  %p1616_p5 = scmp.ne.s32.totalorder %s1411_s3, %s1615_s4  ;;  %p1621_p7 = scmp.lt.s32.totalorder %s1615_s4, %s1615_s4 }
  0x1b   :  { %1508 = vmatprep.mubr.msk.f32.mxu0 %vm1643_vm0, %v1642_v0  ;;  %1513 = vmatprep.mubr.msk.f32.mxu1 %vm1643_vm0, %v1642_v0 }
  0x1c   :  { %1516 = vmatprep.subr.mxu0 %v1642_v0  ;;  %1521 = vmatprep.subr.mxu1 %v1642_v0  ;;  %p1622_p8 = por %p1621_p7, %p1620_p6 }
  0x1d   :  { %1509 = vmatmul.mubr.msk.f32.vlgmr.msra.gmra.mxu0 %vm126_vm1, %v30_v12  ;;  %1514 = vmatmul.mubr.msk.f32.vlgmr.msra.gmra.mxu1 %vm126_vm1, %v31_v13 }
  0x1e   :  { %1517 = vmatpush3.xpose.msk.msra.mxu0 %vm126_vm1, %v41_v14  ;;  %1522 = vmatpush3.xpose.msk.msra.mxu1 %vm126_vm1, %v42_v15  ;;  %p1623_p9 = pnand %p1622_p8, %p1616_p5 }
  0x1f   :  { %1518 = vmatprep.mubr.msk.f32.mxu0 %vm1643_vm0, %v1642_v0  ;;  %1523 = vmatprep.mubr.msk.f32.mxu1 %vm1643_vm0, %v1642_v0 }
  0x20   :  { %95 = vperm.xlu0 %1573, %v1422_v17   ;;  %1526 = vmatprep.subr.mxu0 %v1642_v0 }
  0x21   :  { %1519 = vmatmul.mubr.msk.f32.vlgmr.msra.gmra.mxu0 %vm126_vm1, %v32_v18  ;;  %1524 = vmatmul.mubr.msk.f32.vlgmr.msra.gmra.mxu1 %vm126_vm1, %v33_v19 }
  0x22   :  { %1531 = vmatprep.subr.mxu1 %v1642_v0  ;;  %1528 = vmatprep.mubr.msk.f32.mxu0 %vm1643_vm0, %v1642_v0 }
  0x23   :  { %1533 = vmatprep.mubr.msk.f32.mxu1 %vm1643_vm0, %v1642_v0  ;;  %104 = vperm.xlu1 %1574, %v1425_v20  }
  0x24   :  { %98 = vperm.xlu0 %1573, %v1423_v21   ;;  %1527 = vmatpush3.msra.mxu0 %v44_v26 }
  0x25   :  { %1532 = vmatpush3.msra.mxu1 %v45_v27  ;;  %1536 = vmatprep.subr.mxu0 %v1642_v0 }
  0x26   :  { %1541 = vmatprep.subr.mxu1 %v1642_v0 }
  0x27   :  { %110 = vperm.xlu1 %1574, %v1427_v22  }
  0x28   :  { %107 = vperm.xlu0 %1573, %v1426_v23  }
  0x2b   :  { %116 = vperm.xlu1 %1574, %v1429_v24  }
  0x2c   :  { %113 = vperm.xlu0 %1573, %v1428_v25  }
  0x8f   :  { %v102_v29 = vpop.permute.xlu1 %101 }
  0x90   :  { %vm120_vm4 = vcmp.ge.s32.totalorder %v1739_v31, %v102_v29 }
  0x9b   :  { %v96_v30 = vpop.permute.xlu0 %95 }
  0x9c   :  { %vm118_vm2 = vcmp.ge.s32.totalorder %v1739_v31, %v96_v30 }
  0x9e   :  { %v105_v32 = vpop.permute.xlu1 %104 }
  0x9f   :  { %v99_v33 = vpop.permute.xlu0 %98  ;;  %vm121_vm5 = vcmp.ge.s32.totalorder %v1739_v31, %v105_v32 }
  0xa0   :  { %vm119_vm3 = vcmp.ge.s32.totalorder %v1739_v31, %v99_v33 }
  0xa2   :  { %v111_v43 = vpop.permute.xlu1 %110 }
  0xa3   :  { %v108_v44 = vpop.permute.xlu0 %107  ;;  %vm123_vm7 = vcmp.ge.s32.totalorder %v1739_v31, %v111_v43 }
  0xa4   :  { %vm122_vm6 = vcmp.ge.s32.totalorder %v1739_v31, %v108_v44 }
  0xa6   :  { %v117_v1 = vpop.permute.xlu1 %116 }
  0xa7   :  { %v114_v2 = vpop.permute.xlu0 %113  ;;  %vm125_vm8 = vcmp.ge.s32.totalorder %v1739_v31, %v117_v1 }
  0xa8   :  { %vm124_vm9 = vcmp.ge.s32.totalorder %v1739_v31, %v114_v2 }
  0xd5   :  { %v199_v34 = vpop.f32.mrf.mxu0  ;;  %v275_v35 = vpop.f32.mrf.mxu1 }
  0xd6   :  { %v735_v36 = vmul.f32 0.35355338, %v199_v34  ;;  %v736_v37 = vmul.f32 0.35355338, %v275_v35 }
  0xd7   :  { %v1490_v38 = vpop.f32.mrf.mxu0  ;;  %v1495_v39 = vpop.f32.mrf.mxu1 }
  0xd8   :  { %v743_v40 = vsel %vm118_vm2, -1e+09, %v735_v36  ;;  %v744_v45 = vsel %vm119_vm3, -1e+09, %v736_v37 }
  0xd9   :  { %v351_v41 = vpop.f32.mrf.mxu0  ;;  %v427_v42 = vpop.f32.mrf.mxu1  ;;  %v751_v52 = vsel %vm126_vm1, %v743_v40, -inf  ;;  %v752_v53 = vsel %vm126_vm1, %v744_v45, -inf }
  0xda   :  { %v737_v46 = vmul.f32 0.35355338, %v351_v41  ;;  %v738_v47 = vmul.f32 0.35355338, %v427_v42 }
  0xdb   :  { %v1500_v48 = vpop.f32.mrf.mxu0  ;;  %v1505_v49 = vpop.f32.mrf.mxu1 }
  0xdc   :  { %v745_v50 = vsel %vm120_vm4, -1e+09, %v737_v46  ;;  %v746_v51 = vsel %vm121_vm5, -1e+09, %v738_v47 }
  0xdd   :  { %v753_v54 = vsel %vm126_vm1, %v745_v50, -inf  ;;  %v755_v55 = vsel %vm126_vm1, %v746_v51, -inf  ;;  %v503_v56 = vpop.f32.mrf.mxu0  ;;  %v579_v57 = vpop.f32.mrf.mxu1 }
  0xde   :  { %v754_v58 = vmax.f32 %v751_v52, %v753_v54  ;;  %v756_v59 = vmax.f32 %v752_v53, %v755_v55  ;;  %v739_v60 = vmul.f32 0.35355338, %v503_v56  ;;  %v740_v61 = vmul.f32 0.35355338, %v579_v57 }
  0xdf   :  { %v1510_v62 = vpop.f32.mrf.mxu0  ;;  %v1515_v63 = vpop.f32.mrf.mxu1 }
  0xe0   :  { %v757_v3 = vmax.f32 %v754_v58, %v756_v59  ;;  %v747_v4 = vsel %vm122_vm6, -1e+09, %v739_v60  ;;  %v748_v5 = vsel %vm123_vm7, -1e+09, %v740_v61  ;;  %v46_v62 = vld [vmem:[#allocation2 + $0x90] sm:$0xff]  ;;  %v47_v63 = vld [vmem:[#allocation2 + $0x98] sm:$0xff] }
  0xe1   :  { %v655_v6 = vpop.f32.mrf.mxu0  ;;  %v731_v7 = vpop.f32.mrf.mxu1  ;;  %v758_v12 = vsel %vm126_vm1, %v747_v4, -inf  ;;  %v759_v23 = vsel %vm126_vm1, %v748_v5, -inf }
  0xe2   :  { %v765_v8 = vsub.f32 %v743_v40, %v757_v3  ;;  %v766_v9 = vsub.f32 %v744_v45, %v757_v3  ;;  %v767_v10 = vsub.f32 %v745_v50, %v757_v3  ;;  %v768_v11 = vsub.f32 %v746_v51, %v757_v3  ;;  %v48_v3 = vld [vmem:[#allocation2 + $0xa0] sm:$0xff] }
  0xe3   :  { %v741_v13 = vmul.f32 0.35355338, %v655_v6  ;;  %v742_v14 = vmul.f32 0.35355338, %v731_v7  ;;  %v1520_v15 = vpop.f32.mrf.mxu0  ;;  %v1525_v16 = vpop.f32.mrf.mxu1 }
  0xe4   :  { %v773_v17 = vmul.f32 1.442695, %v765_v8  ;;  %v775_v18 = vmul.f32 1.442695, %v766_v9  ;;  %v777_v19 = vmul.f32 1.442695, %v767_v10 }
  0xe5   :  { %v779_v20 = vmul.f32 1.442695, %v768_v11  ;;  %v749_v21 = vsel %vm124_vm9, -1e+09, %v741_v13  ;;  %v750_v22 = vsel %vm125_vm8, -1e+09, %v742_v14 }
  0xe6   :  { %1575 = vpow2.f32 %v773_v17  ;;  %v760_v24 = vsel %vm126_vm1, %v749_v21, -inf  ;;  %v762_v25 = vsel %vm126_vm1, %v750_v22, -inf  ;;  %v50_v8 = vld [vmem:[#allocation2 + $0xb0] sm:$0xff]  ;;  %v51_v9 = vld [vmem:[#allocation2 + $0xb8] sm:$0xff] }
  0xe7   :  { %1577 = vpow2.f32 %v775_v18  ;;  %v761_v26 = vmax.f32 %v758_v12, %v760_v24  ;;  %v763_v27 = vmax.f32 %v759_v23, %v762_v25 }
  0xe8   :  { %1579 = vpow2.f32 %v777_v19 }
  0xe9   :  { %1581 = vpow2.f32 %v779_v20  ;;  %v764_v28 = vmax.f32 %v761_v26, %v763_v27 }
  0xeb   :  { %v769_v29 = vsub.f32 %v747_v4, %v764_v28  ;;  %v770_v30 = vsub.f32 %v748_v5, %v764_v28  ;;  %v771_v31 = vsub.f32 %v749_v21, %v764_v28  ;;  %v772_v32 = vsub.f32 %v750_v22, %v764_v28  ;;  %v49_v4 = vld [vmem:[#allocation2 + $0xa8] sm:$0xff] }
  0xed   :  { %v781_v33 = vmul.f32 1.442695, %v769_v29  ;;  %v783_v34 = vmul.f32 1.442695, %v770_v30  ;;  %v785_v35 = vmul.f32 1.442695, %v771_v31 }
  0xee   :  { %v787_v36 = vmul.f32 1.442695, %v772_v32 }
  0xef   :  { %1583 = vpow2.f32 %v781_v33 }
  0xf0   :  { %1585 = vpow2.f32 %v783_v34 }
  0xf1   :  { %1587 = vpow2.f32 %v785_v35 }
  0xf2   :  { %1589 = vpow2.f32 %v787_v36 }
  0xf3   :  { %v1576_v37 = vpop.eup %1575 }
  0xf4   :  { %v1578_v38 = vpop.eup %1577  ;;  %v789_v39 = vsel %vm126_vm1, %v1576_v37, 0.0 }
  0xf5   :  { %v1580_v40 = vpop.eup %1579  ;;  %v790_v41 = vsel %vm126_vm1, %v1578_v38, 0.0 }
  0xf6   :  { %v1582_v42 = vpop.eup %1581  ;;  %v791_v43 = vadd.f32 %v790_v41, %v789_v39  ;;  %v792_v44 = vsel %vm126_vm1, %v1580_v40, 0.0 }
  0xf7   :  { %v794_v46 = vsel %vm126_vm1, %v1582_v42, 0.0 }
  0xf8   :  { %v793_v45 = vadd.f32 %v792_v44, %v791_v43 }
  0xfa   :  { %v795_v47 = vadd.f32 %v794_v46, %v793_v45 }
  0xfc   :  { %v1584_v48 = vpop.eup %1583  ;;  %1591 = vrcp.f32 %v795_v47 }
  0xfd   :  { %v1586_v49 = vpop.eup %1585  ;;  %v796_v50 = vsel %vm126_vm1, %v1584_v48, 0.0 }
  0xfe   :  { %v1588_v51 = vpop.eup %1587  ;;  %v797_v52 = vsel %vm126_vm1, %v1586_v49, 0.0 }
  0xff   :  { %v1590_v53 = vpop.eup %1589  ;;  %v798_v54 = vadd.f32 %v797_v52, %v796_v50  ;;  %v799_v55 = vsel %vm126_vm1, %v1588_v51, 0.0 }
 0x100   :  { %v801_v57 = vsel %vm126_vm1, %v1590_v53, 0.0 }
 0x101   :  { %v800_v56 = vadd.f32 %v799_v55, %v798_v54 }
 0x103   :  { %v802_v58 = vadd.f32 %v801_v57, %v800_v56 }
 0x105   :  { %1593 = vrcp.f32 %v802_v58 }
 0x109   :  { %v1592_v59 = vpop.eup %1591 }
 0x10a   :  { %v805_v60 = vmul.f32 %v1592_v59, %v1576_v37  ;;  %v806_v61 = vmul.f32 %v1592_v59, %v1578_v38  ;;  %v807_v1 = vmul.f32 %v1592_v59, %v1580_v40  ;;  %v808_v2 = vmul.f32 %v1592_v59, %v1582_v42 }
 0x10c   :  { %1529 = vmatmul.mubr.msk.f32.vlgmr.msra.gmra.mxu0 %vm126_vm1, %v805_v60  ;;  %1534 = vmatmul.mubr.msk.f32.vlgmr.msra.gmra.mxu1 %vm126_vm1, %v806_v61 }
 0x10d   :  { %1537 = vmatpush3.msra.mxu0 %v46_v62  ;;  %1542 = vmatpush3.msra.mxu1 %v47_v63 }
 0x10e   :  { %1538 = vmatprep.mubr.msk.f32.mxu0 %vm1643_vm0, %v1642_v0  ;;  %1543 = vmatprep.mubr.msk.f32.mxu1 %vm1643_vm0, %v1642_v0 }
 0x10f   :  { %1546 = vmatprep.subr.mxu0 %v1642_v0  ;;  %1551 = vmatprep.subr.mxu1 %v1642_v0 }
 0x110   :  { %1539 = vmatmul.mubr.msk.f32.vlgmr.msra.gmra.mxu0 %vm126_vm1, %v807_v1  ;;  %1544 = vmatmul.mubr.msk.f32.vlgmr.msra.gmra.mxu1 %vm126_vm1, %v808_v2 }
 0x111   :  { %1547 = vmatpush3.msra.mxu0 %v48_v3  ;;  %1552 = vmatpush3.msra.mxu1 %v49_v4 }
 0x112   :  { %v1594_v5 = vpop.eup %1593  ;;  %1548 = vmatprep.mubr.msk.f32.mxu0 %vm1643_vm0, %v1642_v0  ;;  %1553 = vmatprep.mubr.msk.f32.mxu1 %vm1643_vm0, %v1642_v0 }
 0x113   :  { %v809_v6 = vmul.f32 %v1594_v5, %v1584_v48  ;;  %v810_v7 = vmul.f32 %v1594_v5, %v1586_v49  ;;  %1556 = vmatprep.subr.mxu0 %v1642_v0  ;;  %1561 = vmatprep.subr.mxu1 %v1642_v0  ;;  %v811_v10 = vmul.f32 %v1594_v5, %v1588_v51 }
 0x114   :  { %v812_v11 = vmul.f32 %v1594_v5, %v1590_v53 }
 0x115   :  { %1549 = vmatmul.mubr.msk.f32.vlgmr.msra.gmra.mxu0 %vm126_vm1, %v809_v6  ;;  %1554 = vmatmul.mubr.msk.f32.vlgmr.msra.gmra.mxu1 %vm126_vm1, %v810_v7 }
 0x116   :  { %1557 = vmatpush3.msra.mxu0 %v50_v8  ;;  %1562 = vmatpush3.msra.mxu1 %v51_v9 }
 0x117   :  { %1558 = vmatprep.mubr.msk.f32.mxu0 %vm1643_vm0, %v1642_v0  ;;  %1563 = vmatprep.mubr.msk.f32.mxu1 %vm1643_vm0, %v1642_v0 }
 0x119   :  { %1559 = vmatmul.mubr.msk.f32.vlgmr.msra.gmra.mxu0 %vm126_vm1, %v811_v10  ;;  %1564 = vmatmul.mubr.msk.f32.vlgmr.msra.gmra.mxu1 %vm126_vm1, %v812_v11 }
 0x1cc   :  { %v882_v12 = vpop.f32.mrf.mxu0  ;;  %v955_v13 = vpop.f32.mrf.mxu1 }
 0x1cd   :  { %1397 = vst.msk [vmem:[#allocation5] sm:$0xff] %vm126_vm1, %v882_v12  ;;  %1398 = vst.msk [vmem:[#allocation5 + $0x8] sm:$0xff] %vm126_vm1, %v955_v13 }
 0x1ce   :  { %v1530_v14 = vpop.f32.mrf.mxu0  ;;  %v1535_v15 = vpop.f32.mrf.mxu1 }
 0x1d0   :  { %v1028_v16 = vpop.f32.mrf.mxu0  ;;  %v1101_v17 = vpop.f32.mrf.mxu1 }
 0x1d1   :  { %1399 = vst.msk [vmem:[#allocation5 + $0x10] sm:$0xff] %vm126_vm1, %v1028_v16  ;;  %1400 = vst.msk [vmem:[#allocation5 + $0x18] sm:$0xff] %vm126_vm1, %v1101_v17 }
 0x1d2   :  { %v1540_v0 = vpop.f32.mrf.mxu0  ;;  %v1545_v18 = vpop.f32.mrf.mxu1 }
 0x1d5   :  { %v1174_v19 = vpop.f32.mrf.mxu0  ;;  %v1247_v20 = vpop.f32.mrf.mxu1 }
 0x1d6   :  { %1401 = vst.msk [vmem:[#allocation5 + $0x20] sm:$0xff] %vm126_vm1, %v1174_v19  ;;  %1402 = vst.msk [vmem:[#allocation5 + $0x28] sm:$0xff] %vm126_vm1, %v1247_v20 }
 0x1d7   :  { %v1550_v21 = vpop.f32.mrf.mxu0  ;;  %v1555_v22 = vpop.f32.mrf.mxu1 }
 0x1d9   :  { %v1320_v23 = vpop.f32.mrf.mxu0  ;;  %v1393_v24 = vpop.f32.mrf.mxu1 }
 0x1da   :  { %1403 = vst.msk [vmem:[#allocation5 + $0x30] sm:$0xff] %vm126_vm1, %v1320_v23  ;;  %1404 = vst.msk [vmem:[#allocation5 + $0x38] sm:$0xff] %vm126_vm1, %v1393_v24 }
 0x1db   :  { %v1560_v25 = vpop.f32.mrf.mxu0  ;;  %v1565_v26 = vpop.f32.mrf.mxu1 }
 0x1dc   :  { %1626 = shalt.err (!%p1623_p9)
}
 0x1dd   :  { %1416 = dma.vmem_to_hbm [thread:$0]  %s1411_s3, 1024, %s1805_s2, [#allocation4], %s1640_s12, %s1640_s12, %s1641_s13  }
 0x1de   :  { %1637 = dma.done.wait [#allocation4], 1024  }
 0x1df   :  { %1638 = vsyncadd [#allocation4], 4294966272 }
 0x1e0   :  { %1420 = vsyncpa [#allocation3], 1 }
 0x1e1   :  { %1421 = vsyncpa [#allocation4], 1 }

</bundles_post_ra>
